<compile_context>
chip_gen: v7x
topology: tpu7x:2x2x1
jax: 0.10.0
libtpu: 0.0.40
codegen_flags: <defaults>
</compile_context>

<pallas_src>
import jax
import jax.numpy as jnp
import numpy as np
from jax.experimental import pallas as pl
from jax.experimental.pallas import tpu as pltpu


def _action_attention_kernel(x_ref, k_ref, wcat_ref, bcat_ref, o_ref):
    # Block views for the current batch tile:
    #   x_ref    : (tb, D)        raw queries (f32, cast to MXU dtype here)
    #   k_ref    : (tb, N*D)      raw keys, trailing dims flattened (f32)
    #   wcat_ref : (D, D+A)       [Wqk * 1/sqrt(D) | Wa^T]   (matmul dtype)
    #   bcat_ref : (1, D+A)       [bqk * 1/sqrt(D) | ba]     (f32)
    #   o_ref    : (tb, N*A)      lane-dense output (f32)
    tb, d = x_ref.shape
    n = k_ref.shape[1] // d
    n_act = wcat_ref.shape[1] - d

    # Single fused MXU pass for the whole query side: y = x @ Wcat + bcat.
    # (Key projection is folded into Wqk in the wrapper; its bias term is
    #  constant across keys and cancels in the softmax.)
    x = x_ref[...].astype(wcat_ref.dtype)
    y = jnp.dot(x, wcat_ref[...],
                preferred_element_type=jnp.float32) + bcat_ref[...]  # (tb, D+A)
    qk = y[:, :d]                      # (tb, D)   pre-scaled query
    a = y[:, d:]                       # (tb, A)   action logits

    # Scores against the RAW f32 keys: per-key lane slice of the keys tile,
    # VPU multiply + lane reduction.  Everything stays rank-2 / lane-friendly.
    cols = []
    for i in range(n):
        k_i = k_ref[:, i * d:(i + 1) * d]                       # (tb, D) f32
        cols.append(jnp.sum(qk * k_i, axis=-1, keepdims=True))  # (tb, 1)
    s = jnp.concatenate(cols, axis=-1)                          # (tb, N) f32

    # Numerically stable softmax over keys; divide goes to the EUP.
    s = s - jnp.max(s, axis=-1, keepdims=True)
    e = jnp.exp(s)
    w = e * pl.reciprocal(jnp.sum(e, axis=-1, keepdims=True), approx=True)

    # Lane-dense outer product: out[b, i*A + j] = w[b, i] * a[b, j], built as
    # one (tb, N*A) row so stores are unmasked full-lane writes.
    out_cols = [w[:, i:i + 1] * a for i in range(n)]            # N x (tb, A)
    o_ref[...] = jnp.concatenate(out_cols, axis=-1).astype(o_ref.dtype)


def action_attention_v2(queries, keys, params, *, tb=None,
                        matmul_dtype=jnp.bfloat16):
    """queries: (B, D) f32; keys: (B, N, D) f32 -> (B, N, n_actions) f32."""
    wq, bq, wk, bk, wa, ba = (params["wq"], params["bq"], params["wk"],
                              params["bk"], params["wa"], params["ba"])
    B, D = queries.shape
    N = keys.shape[1]
    A = wa.shape[0]
    scale = 1.0 / float(np.sqrt(D))

    # Fold the key projection onto the query side (exact in f32):
    #   q . (keys_n @ Wk^T + bk) = (x @ (Wq^T Wk) + bq @ Wk) . keys_n + q.bk
    # q.bk is uniform over keys -> cancels in softmax -> dropped.  The
    # 1/sqrt(D) scale is folded into Wqk / bqk as well.
    wqk = (wq.T @ wk) * scale                               # (D, D) f32
    bqk = (bq @ wk) * scale                                 # (D,)   f32

    # Fuse the query-side projections into one (D, D+A) weight -> one MXU
    # matmul per tile inside the kernel.  Biases stay f32.
    wcat = jnp.concatenate([wqk, wa.T], axis=1).astype(matmul_dtype)  # (D, D+A)
    bcat = jnp.concatenate([bqk, ba]).reshape(1, D + A).astype(jnp.float32)

    # Keys: no wrapper-side cast, no pad (no extra HBM pass); flatten trailing
    # dims (free row-major collapse) so the kernel tile is a lane-dense 2-D
    # block of width N*D.
    keys2 = keys.reshape(B, N * D)

    # Batch tile: >=2 grid steps when possible (v7x megacore), multiple of 8,
    # keys tile bounded so the double-buffered VMEM footprint stays small even
    # on 64 MiB parts.
    if tb is None:
        tb = max(8, (B + 1) // 2)
    tb = min(tb, 256, max(8, (8 * 1024 * 1024) // (N * D * 4)))
    if tb >= B:
        tb = B                        # single full-dim block (legal for any B)
    else:
        tb = max(8, (tb // 8) * 8)
    grid = (pl.cdiv(B, tb),)          # ragged last tile is masked, never padded

    out = pl.pallas_call(
        _action_attention_kernel,
        out_shape=jax.ShapeDtypeStruct((B, N * A), jnp.float32),
        grid_spec=pltpu.PrefetchScalarGridSpec(
            num_scalar_prefetch=0,
            grid=grid,
            in_specs=[
                pl.BlockSpec((tb, D), lambda b: (b, 0)),        # queries tile
                pl.BlockSpec((tb, N * D), lambda b: (b, 0)),    # raw keys tile
                # TODO(synk): pipeline_mode=pl.Buffered(1) on the weight specs
                # if D ever grows large enough for double-buffering to matter.
                pl.BlockSpec((D, D + A), lambda b: (0, 0)),     # [Wqk*s | Wa^T]
                pl.BlockSpec((1, D + A), lambda b: (0, 0)),     # [bqk*s | ba]
            ],
            out_specs=pl.BlockSpec((tb, N * A), lambda b: (b, 0)),
        ),
        compiler_params=pltpu.CompilerParams(
            dimension_semantics=("parallel",),
            vmem_limit_bytes=48 * 1024 * 1024),
    )(queries, keys2, wcat, bcat)

    # (B, N*A) -> (B, N, A): trailing-dim split, effectively free in XLA.
    return out.reshape(B, N, A)


def _reference(queries, keys, params):
    """Pure-JAX reference mirroring the PyTorch forward exactly (f32)."""
    wq, bq, wk, bk, wa, ba = (params["wq"], params["bq"], params["wk"],
                              params["bk"], params["wa"], params["ba"])
    B, D = queries.shape
    A = wa.shape[0]
    a = queries @ wa.T + ba                              # (B, A)
    q = (queries @ wq.T + bq).reshape(B, 1, D)           # (B, 1, D)
    k = (keys @ wk.T + bk).reshape(B, -1, D)             # (B, N, D)
    v = jnp.einsum("bqd,bkd->bqk", q, k) / np.sqrt(D)    # (B, 1, N)
    v = jax.nn.softmax(v, axis=-1)
    out = jnp.einsum("bqn,bqa->bna", v, a.reshape(B, 1, A))
    return out                                           # (B, N, A)


def _init_params(key, model_dim, n_actions):
    ks = jax.random.split(key, 6)
    lim = 1.0 / np.sqrt(model_dim)
    u = lambda k, shape: jax.random.uniform(k, shape, jnp.float32, -lim, lim)
    return {
        "wq": u(ks[0], (model_dim, model_dim)),
        "bq": u(ks[1], (model_dim,)),
        "wk": u(ks[2], (model_dim, model_dim)),
        "bk": u(ks[3], (model_dim,)),
        "wa": u(ks[4], (n_actions, model_dim)),
        "ba": u(ks[5], (n_actions,)),
    }


if __name__ == "__main__":
    B, D, N, A = 32, 32, 8, 8          # batch, model_dim, n_keys, n_actions

    root = jax.random.PRNGKey(0)
    k_params, k_q, k_k = jax.random.split(root, 3)
    params = _init_params(k_params, D, A)
    queries = jax.random.normal(k_q, (B, D), jnp.float32)
    keys = jax.random.normal(k_k, (B, N, D), jnp.float32)

    ref = jax.block_until_ready(_reference(queries, keys, params))

    # f32 MXU path: only approximations are the approx reciprocal and the
    # (softmax-invariant) dropped q.bk constant -> tight tolerance.
    out_f32 = jax.block_until_ready(
        action_attention_v2(queries, keys, params, tb=16,
                            matmul_dtype=jnp.float32))
    np.testing.assert_allclose(np.asarray(out_f32), np.asarray(ref),
                               rtol=5e-3, atol=5e-3)

    # bf16 MXU path (default; operand rounding -> looser tolerance).
    out_bf16 = jax.block_until_ready(
        action_attention_v2(queries, keys, params))
    np.testing.assert_allclose(np.asarray(out_bf16), np.asarray(ref),
                               rtol=5e-2, atol=5e-2)

    assert out_bf16.shape == (B, N, A)
    print("KERNEL_OK")
</pallas_src>

<mosaic_0001>
module attributes {stable_mosaic.version = 11 : i64} {
  func.func @_action_attention_kernel(%arg0: i32, %arg1: memref<16x32xf32, #tpu.memory_space<vmem>>, %arg2: memref<16x256xf32, #tpu.memory_space<vmem>>, %arg3: memref<32x40xf32, #tpu.memory_space<vmem>>, %arg4: memref<1x40xf32, #tpu.memory_space<vmem>>, %arg5: memref<16x64xf32, #tpu.memory_space<vmem>>) attributes {dimension_semantics = [#tpu.dimension_semantics<parallel>], iteration_bounds = array<i64: 2>, scalar_prefetch = 0 : i64, scratch_operands = 0 : i64, tpu.core_type = #tpu.core_type<tc>, window_params = [{transform_indices = @transform_0, window_bounds = array<i64: 16, 32>}, {transform_indices = @transform_1, window_bounds = array<i64: 16, 256>}, {pipeline_mode = #tpu.pipeline_mode<synchronous>, transform_indices = @transform_2, window_bounds = array<i64: 32, 40>}, {pipeline_mode = #tpu.pipeline_mode<synchronous>, transform_indices = @transform_3, window_bounds = array<i64: 1, 40>}, {transform_indices = @transform_4, window_bounds = array<i64: 16, 64>}]} {
    %c0 = arith.constant 0 : index
    %c0_0 = arith.constant 0 : index
    %0 = vector.load %arg1[%c0, %c0_0] : memref<16x32xf32, #tpu.memory_space<vmem>>, vector<16x32xf32>
    %c0_1 = arith.constant 0 : index
    %c0_2 = arith.constant 0 : index
    %1 = vector.load %arg3[%c0_1, %c0_2] : memref<32x40xf32, #tpu.memory_space<vmem>>, vector<32x40xf32>
    %cst = arith.constant dense<0.000000e+00> : vector<16x40xf32>
    %2 = tpu.matmul %0, %1, %cst {dimension_numbers = #tpu.dot_dimension_numbers<[1], [0], [0], [1], [0, 0, 1, 1], [], []>} : vector<16x32xf32>, vector<32x40xf32>, vector<16x40xf32> -> vector<16x40xf32>
    %c0_3 = arith.constant 0 : index
    %c0_4 = arith.constant 0 : index
    %3 = vector.load %arg4[%c0_3, %c0_4] : memref<1x40xf32, #tpu.memory_space<vmem>>, vector<1x40xf32>
    %4 = vector.broadcast %3 : vector<1x40xf32> to vector<16x40xf32>
    %5 = arith.addf %2, %4 : vector<16x40xf32>
    %6 = vector.extract_strided_slice %5 {offsets = [0, 0], sizes = [16, 32], strides = [1, 1]} : vector<16x40xf32> to vector<16x32xf32>
    %7 = vector.extract_strided_slice %5 {offsets = [0, 32], sizes = [16, 8], strides = [1, 1]} : vector<16x40xf32> to vector<16x8xf32>
    %c0_5 = arith.constant 0 : index
    %c0_6 = arith.constant 0 : index
    %8 = vector.load %arg2[%c0_5, %c0_6] : memref<16x256xf32, #tpu.memory_space<vmem>>, vector<16x32xf32>
    %9 = arith.mulf %6, %8 : vector<16x32xf32>
    %cst_7 = arith.constant dense<0.000000e+00> : vector<16xf32>
    %10 = vector.multi_reduction <add>, %9, %cst_7 [1] : vector<16x32xf32> to vector<16xf32>
    %11 = vector.shape_cast %10 : vector<16xf32> to vector<16x1xf32>
    %c0_8 = arith.constant 0 : index
    %c32 = arith.constant 32 : index
    %12 = vector.load %arg2[%c0_8, %c32] : memref<16x256xf32, #tpu.memory_space<vmem>>, vector<16x32xf32>
    %13 = arith.mulf %6, %12 : vector<16x32xf32>
    %cst_9 = arith.constant dense<0.000000e+00> : vector<16xf32>
    %14 = vector.multi_reduction <add>, %13, %cst_9 [1] : vector<16x32xf32> to vector<16xf32>
    %15 = vector.shape_cast %14 : vector<16xf32> to vector<16x1xf32>
    %c0_10 = arith.constant 0 : index
    %c64 = arith.constant 64 : index
    %16 = vector.load %arg2[%c0_10, %c64] : memref<16x256xf32, #tpu.memory_space<vmem>>, vector<16x32xf32>
    %17 = arith.mulf %6, %16 : vector<16x32xf32>
    %cst_11 = arith.constant dense<0.000000e+00> : vector<16xf32>
    %18 = vector.multi_reduction <add>, %17, %cst_11 [1] : vector<16x32xf32> to vector<16xf32>
    %19 = vector.shape_cast %18 : vector<16xf32> to vector<16x1xf32>
    %c0_12 = arith.constant 0 : index
    %c96 = arith.constant 96 : index
    %20 = vector.load %arg2[%c0_12, %c96] : memref<16x256xf32, #tpu.memory_space<vmem>>, vector<16x32xf32>
    %21 = arith.mulf %6, %20 : vector<16x32xf32>
    %cst_13 = arith.constant dense<0.000000e+00> : vector<16xf32>
    %22 = vector.multi_reduction <add>, %21, %cst_13 [1] : vector<16x32xf32> to vector<16xf32>
    %23 = vector.shape_cast %22 : vector<16xf32> to vector<16x1xf32>
    %c0_14 = arith.constant 0 : index
    %c128 = arith.constant 128 : index
    %24 = vector.load %arg2[%c0_14, %c128] : memref<16x256xf32, #tpu.memory_space<vmem>>, vector<16x32xf32>
    %25 = arith.mulf %6, %24 : vector<16x32xf32>
    %cst_15 = arith.constant dense<0.000000e+00> : vector<16xf32>
    %26 = vector.multi_reduction <add>, %25, %cst_15 [1] : vector<16x32xf32> to vector<16xf32>
    %27 = vector.shape_cast %26 : vector<16xf32> to vector<16x1xf32>
    %c0_16 = arith.constant 0 : index
    %c160 = arith.constant 160 : index
    %28 = vector.load %arg2[%c0_16, %c160] : memref<16x256xf32, #tpu.memory_space<vmem>>, vector<16x32xf32>
    %29 = arith.mulf %6, %28 : vector<16x32xf32>
    %cst_17 = arith.constant dense<0.000000e+00> : vector<16xf32>
    %30 = vector.multi_reduction <add>, %29, %cst_17 [1] : vector<16x32xf32> to vector<16xf32>
    %31 = vector.shape_cast %30 : vector<16xf32> to vector<16x1xf32>
    %c0_18 = arith.constant 0 : index
    %c192 = arith.constant 192 : index
    %32 = vector.load %arg2[%c0_18, %c192] : memref<16x256xf32, #tpu.memory_space<vmem>>, vector<16x32xf32>
    %33 = arith.mulf %6, %32 : vector<16x32xf32>
    %cst_19 = arith.constant dense<0.000000e+00> : vector<16xf32>
    %34 = vector.multi_reduction <add>, %33, %cst_19 [1] : vector<16x32xf32> to vector<16xf32>
    %35 = vector.shape_cast %34 : vector<16xf32> to vector<16x1xf32>
    %c0_20 = arith.constant 0 : index
    %c224 = arith.constant 224 : index
    %36 = vector.load %arg2[%c0_20, %c224] : memref<16x256xf32, #tpu.memory_space<vmem>>, vector<16x32xf32>
    %37 = arith.mulf %6, %36 : vector<16x32xf32>
    %cst_21 = arith.constant dense<0.000000e+00> : vector<16xf32>
    %38 = vector.multi_reduction <add>, %37, %cst_21 [1] : vector<16x32xf32> to vector<16xf32>
    %39 = vector.shape_cast %38 : vector<16xf32> to vector<16x1xf32>
    %40 = tpu.concatenate %11, %15, %19, %23, %27, %31, %35, %39 in 1 : vector<16x1xf32>, vector<16x1xf32>, vector<16x1xf32>, vector<16x1xf32>, vector<16x1xf32>, vector<16x1xf32>, vector<16x1xf32>, vector<16x1xf32> -> vector<16x8xf32>
    %cst_22 = arith.constant dense<0xFF800000> : vector<16xf32>
    %41 = vector.multi_reduction <maximumf>, %40, %cst_22 [1] : vector<16x8xf32> to vector<16xf32>
    %42 = vector.shape_cast %41 : vector<16xf32> to vector<16x1xf32>
    %43 = vector.broadcast %42 : vector<16x1xf32> to vector<16x8xf32>
    %44 = arith.subf %40, %43 : vector<16x8xf32>
    %45 = math.exp %44 : vector<16x8xf32>
    %cst_23 = arith.constant dense<0.000000e+00> : vector<16xf32>
    %46 = vector.multi_reduction <add>, %45, %cst_23 [1] : vector<16x8xf32> to vector<16xf32>
    %47 = vector.shape_cast %46 : vector<16xf32> to vector<16x1xf32>
    %48 = tpu.reciprocal %47 {approx = true} : vector<16x1xf32> -> vector<16x1xf32>
    %49 = vector.broadcast %48 : vector<16x1xf32> to vector<16x8xf32>
    %50 = arith.mulf %45, %49 : vector<16x8xf32>
    %51 = vector.extract_strided_slice %50 {offsets = [0, 0], sizes = [16, 1], strides = [1, 1]} : vector<16x8xf32> to vector<16x1xf32>
    %52 = vector.broadcast %51 : vector<16x1xf32> to vector<16x8xf32>
    %53 = arith.mulf %52, %7 : vector<16x8xf32>
    %54 = vector.extract_strided_slice %50 {offsets = [0, 1], sizes = [16, 1], strides = [1, 1]} : vector<16x8xf32> to vector<16x1xf32>
    %55 = vector.broadcast %54 : vector<16x1xf32> to vector<16x8xf32>
    %56 = arith.mulf %55, %7 : vector<16x8xf32>
    %57 = vector.extract_strided_slice %50 {offsets = [0, 2], sizes = [16, 1], strides = [1, 1]} : vector<16x8xf32> to vector<16x1xf32>
    %58 = vector.broadcast %57 : vector<16x1xf32> to vector<16x8xf32>
    %59 = arith.mulf %58, %7 : vector<16x8xf32>
    %60 = vector.extract_strided_slice %50 {offsets = [0, 3], sizes = [16, 1], strides = [1, 1]} : vector<16x8xf32> to vector<16x1xf32>
    %61 = vector.broadcast %60 : vector<16x1xf32> to vector<16x8xf32>
    %62 = arith.mulf %61, %7 : vector<16x8xf32>
    %63 = vector.extract_strided_slice %50 {offsets = [0, 4], sizes = [16, 1], strides = [1, 1]} : vector<16x8xf32> to vector<16x1xf32>
    %64 = vector.broadcast %63 : vector<16x1xf32> to vector<16x8xf32>
    %65 = arith.mulf %64, %7 : vector<16x8xf32>
    %66 = vector.extract_strided_slice %50 {offsets = [0, 5], sizes = [16, 1], strides = [1, 1]} : vector<16x8xf32> to vector<16x1xf32>
    %67 = vector.broadcast %66 : vector<16x1xf32> to vector<16x8xf32>
    %68 = arith.mulf %67, %7 : vector<16x8xf32>
    %69 = vector.extract_strided_slice %50 {offsets = [0, 6], sizes = [16, 1], strides = [1, 1]} : vector<16x8xf32> to vector<16x1xf32>
    %70 = vector.broadcast %69 : vector<16x1xf32> to vector<16x8xf32>
    %71 = arith.mulf %70, %7 : vector<16x8xf32>
    %72 = vector.extract_strided_slice %50 {offsets = [0, 7], sizes = [16, 1], strides = [1, 1]} : vector<16x8xf32> to vector<16x1xf32>
    %73 = vector.broadcast %72 : vector<16x1xf32> to vector<16x8xf32>
    %74 = arith.mulf %73, %7 : vector<16x8xf32>
    %75 = tpu.concatenate %53, %56, %59, %62, %65, %68, %71, %74 in 1 : vector<16x8xf32>, vector<16x8xf32>, vector<16x8xf32>, vector<16x8xf32>, vector<16x8xf32>, vector<16x8xf32>, vector<16x8xf32>, vector<16x8xf32> -> vector<16x64xf32>
    %c0_24 = arith.constant 0 : index
    %c0_25 = arith.constant 0 : index
    %76 = vector.load %arg5[%c0_24, %c0_25] : memref<16x64xf32, #tpu.memory_space<vmem>>, vector<16x64xf32>
    tpu.vector_store %arg5[%c0_24, %c0_25], %75 {strides = array<i32>} : memref<16x64xf32, #tpu.memory_space<vmem>>, vector<16x64xf32>,
    return
  }
  func.func @transform_0(%arg0: i32) -> (i32, i32) {
    %c0_i32 = arith.constant 0 : i32
    %c0_i32_0 = arith.constant 0 : i32
    return %arg0, %c0_i32 : i32, i32
  }
  func.func @transform_1(%arg0: i32) -> (i32, i32) {
    %c0_i32 = arith.constant 0 : i32
    %c0_i32_0 = arith.constant 0 : i32
    return %arg0, %c0_i32 : i32, i32
  }
  func.func @transform_2(%arg0: i32) -> (i32, i32) {
    %c0_i32 = arith.constant 0 : i32
    %c0_i32_0 = arith.constant 0 : i32
    %c0_i32_1 = arith.constant 0 : i32
    return %c0_i32, %c0_i32_0 : i32, i32
  }
  func.func @transform_3(%arg0: i32) -> (i32, i32) {
    %c0_i32 = arith.constant 0 : i32
    %c0_i32_0 = arith.constant 0 : i32
    %c0_i32_1 = arith.constant 0 : i32
    return %c0_i32, %c0_i32_0 : i32, i32
  }
  func.func @transform_4(%arg0: i32) -> (i32, i32) {
    %c0_i32 = arith.constant 0 : i32
    %c0_i32_0 = arith.constant 0 : i32
    return %arg0, %c0_i32 : i32, i32
  }
}

</mosaic_0001>

<bundles_post_ra>
// kernel: tpu_custom_call.1
= control target key start
LH: loop header
LB: loop body
LE: loop exit
PB: predicated region body
PF: predicated region fallthrough
CT: control target
= control target key end

     0   :  { %s1533_s0 = inlined_call_operand.hbm [shape: f32[32,32], index: 0, kind: input, shape index: {}]   ;;  %s1534_s1 = inlined_call_operand.hbm [shape: f32[32,256], index: 1, kind: input, shape index: {}]   ;;  %s1535_s2 = inlined_call_operand.hbm [shape: f32[32,40], index: 2, kind: input, shape index: {}]   ;;  %s1536_s3 = inlined_call_operand.vmem [shape: f32[1,40], index: 3, kind: input, shape index: {}]   ;;  %s1537_s4 = inlined_call_operand.hbm [shape: f32[32,64], index: 4, kind: output, shape index: {}]  }
   0x1   :  { %1541 = sst [smem:[#allocation13_spill]] %s1533_s0 }
   0x2   :  { %1542 = sst [smem:[#allocation14_spill]] %s1535_s2 }
   0x3   :  { %9 = vsyncpa [#allocation3], 0 }
   0x4   :  { %11 = vsyncpa [#allocation3 + $0x1], 0 }
   0x5   :  { %12 = vsyncpa [#allocation6], 0 }
   0x6   :  { %14 = vsyncpa [#allocation6 + $0x1], 0 }
   0x7   :  { %15 = vsyncpa [#allocation4], 0 }
   0x8   :  { %17 = vsyncpa [#allocation4 + $0x1], 0  ;;  %s1176_s15 = smov 0   ;;  %s1178_s16 = smov 0  }
   0x9   :  { %s1180_s17 = smov 0   ;;  %s1182_s18 = smov 0  }
   0xa LB: > { %s1197_s19 = sadd.s32 4294967295, %s1123_s18   ;;  %s800_s20 = sadd.s32 4294967294, %s1123_s18   ;;  %s1123_s18 = sphi %s1182_s18, %s1561_s18   ;;  %s1119_s17 = sphi %s1180_s17, %s1560_s17   ;;  %s1115_s16 = sphi %s1178_s16, %s1559_s16   ;;  %s1111_s15 = sphi %s1176_s15, %s1558_s15  }
   0xb   : > { %p43_p0 = scmp.ne.s32.totalorder %s1115_s16, %s1111_s15  ;;  %p1538_p1 = scmp.eq.s32.totalorder %s1197_s19, 0 }
   0xc   : > { %p141_p3 = scmp.eq.s32.totalorder %s800_s20, 1  ;;  %p801_p5 = scmp.ge.s32.totalorder %s1123_s18, 1 }
   0xd   : > { %p1206_p4 = por %p1538_p1, %p43_p0  ;;  %p148_p7 = scmp.lt.s32.totalorder %s1123_s18, 3 }
   0xe   : > { %p1211_p6 = por %p141_p3, %p43_p0  ;;  %s1125_s24 = smov [#allocation7]  }
   0xf   : > { %s1543_s21 = scalar_select %p1206_p4, 1, 0 }
  0x10   : > { %s1544_s22 = scalar_select %p1211_p6, 1, 0 }
  0x11   : > { %p1216_p8 = pnand %p801_p5, %p148_p7  ;;  %s160_s25 = sshll.u32 %s1125_s24, 4  ;;  %s1220_s25 = int_to_ptr.vmem [resolvable:$true] %s160_s25 }
  0x12   : > { %s1232_s27 = sadd.s32 1, %s1123_s18   ;;  %s30_s28 = sadd.s32 1, %s1119_s17 }
  0x13   : > { %s1545_s23 = scalar_select %p1216_p8, 1, 0 }
  0x14   : > { %p863_p9 = pneg %p1216_p8  ;;  %s27_s29 = ssub.s32 %s1123_s18, %s1232_s27 }
  0x15   : > { %s1547_s2 = sld [smem:[#allocation14_spill]] }
  0x16   : > { %p1227_p11 = pnand %p863_p9, %p1538_p1 }
  0x18   : > { %p963_p13 = pneg %p1227_p11 }
  0x1b   : > { %s961_s6 = scalar_lea.hbm %s1547_s2, 512 }
  0x1c   : > { %p962_p12 = scmp.ne.s32.totalorder %s1547_s2, %s961_s6  ;;  %p968_p5 = scmp.lt.u32.totalorder %s961_s6, %s1547_s2 }
  0x1e   : > { %p964_p0 = pnand %p963_p13, %p962_p12 }
  0x20   : > { %p965_p3 = pneg %p964_p0 }
  0x22   : > { %p970_p7 = pnand %p968_p5, %p965_p3 }
  0x24   : > { %973 = shalt.err (!%p970_p7)
}
  0x25   : > { %s974_s11 = scalar_lea.vmem %s1220_s25, 512  ;;  %p982_p2 = scmp.lt.s32.totalorder %s1220_s25, %s1220_s25 }
  0x26   : > { %p975_p9 = scmp.ne.s32.totalorder %s1220_s25, %s974_s11  ;;  %p983_p6 = scmp.lt.s32.totalorder %s974_s11, %s974_s11 }
  0x28   : > { %p977_p10 = pnand %p975_p9, %p963_p13  ;;  %p984_p4 = por %p983_p6, %p982_p2 }
  0x2a   : > { %p978_p1 = pneg %p977_p10 }
  0x2c   : > { %p985_p8 = pnand %p984_p4, %p978_p1 }
  0x2e   : > { %988 = shalt.err (!%p985_p8)
}
  0x2f   : > { %s1126_s12 = smov 128   ;;  %s1127_s13 = smov 8  }
  0x30   : > { %866 = dma.hbm_to_vmem [thread:$0]  (!%p1227_p11), %s1547_s2, 512, %s1220_s25, [#allocation6], %s1126_s12, %s1126_s12, %s1127_s13  }
  0x31   : > { %p28_p1 = scmp.eq.s32.totalorder %s27_s29, 0  ;;  %p37_p2 = scmp.ne.s32.totalorder %s1119_s17, %s1115_s16 }
  0x32   : > { %p38_p4 = scmp.eq.s32.totalorder %s1123_s18, 0  ;;  %p879_p6 = scmp.lt.s32.totalorder %s1123_s18, 2 }
  0x33   : > { %s1266_s24 = scalar_select %p28_p1, %s1119_s17, %s30_s28  }
  0x34   : > { %p39_p8 = por %p38_p4, %p37_p2  ;;  %p1548_p10 = scmp.eq.s32.totalorder %s1197_s19, 1 }
  0x35   : > { %s1275_s26 = sand.u32 1, %s1119_s17   ;;  %s824_s5 = sshll.u32 %s1123_s18, 8 }
  0x36   : > { %p1270_p12 = por %p1548_p10, %p37_p2  ;;  %s804_s6 = sshll.u32 %s1275_s26, 4 }
  0x37   : > { %s1550_s0 = sld [smem:[#allocation13_spill]]  ;;  %s181_s28 = scalar_lea.vmem [#allocation2], %s804_s6 }
  0x38   : > { %s188_s8 = sshll.u32 %s181_s28, 4  ;;  %p1284_p11 = pnand %p879_p6, %p39_p8  ;;  %s1288_s8 = int_to_ptr.vmem [resolvable:$true] %s188_s8 }
  0x39   : > { %s198_s10 = sand.u32 1, %s1123_s18   ;;  %s178_s11 = scalar_lea.sflag [#allocation3], %s1275_s26 }
  0x3a   : > { %p991_p0 = pneg %p1284_p11 }
  0x3d   : > { %s1282_s29 = scalar_lea.hbm %s1550_s0, %s824_s5  ;;  %s994_s6 = scalar_lea.hbm %s1550_s0, 512 }
  0x3e   : > { %s989_s14 = scalar_lea.hbm %s1282_s29, 256  ;;  %p995_p7 = scmp.lt.u32.totalorder %s1282_s29, %s1550_s0 }
  0x3f   : > { %p990_p13 = scmp.ne.s32.totalorder %s1282_s29, %s989_s14  ;;  %p996_p9 = scmp.lt.u32.totalorder %s994_s6, %s989_s14 }
  0x40   : > { %p998_p2 = scmp.lt.u32.totalorder %s989_s14, %s1282_s29 }
  0x41   : > { %p992_p3 = pnand %p991_p0, %p990_p13  ;;  %p997_p1 = por %p996_p9, %p995_p7 }
  0x43   : > { %p993_p5 = pneg %p992_p3  ;;  %p999_p4 = por %p998_p2, %p997_p1 }
  0x45   : > { %p1000_p6 = pnand %p999_p4, %p993_p5 }
  0x47   : > { %1003 = shalt.err (!%p1000_p6)
}
  0x48   : > { %s1004_s28 = scalar_lea.vmem %s1288_s8, 256  ;;  %s1128_s20 = smov [#allocation2]  }
  0x49   : > { %p1005_p8 = scmp.ne.s32.totalorder %s1288_s8, %s1004_s28  ;;  %s1009_s5 = sshll.u32 %s1128_s20, 4  ;;  %s1010_s5 = int_to_ptr.vmem [resolvable:$false] %s1009_s5 }
  0x4a   : > { %s1011_s25 = scalar_lea.vmem %s1010_s5, 512  ;;  %p1012_p3 = scmp.lt.s32.totalorder %s1288_s8, %s1010_s5 }
  0x4b   : > { %p1007_p10 = pnand %p1005_p8, %p991_p0  ;;  %p1013_p7 = scmp.lt.s32.totalorder %s1011_s25, %s1004_s28 }
  0x4d   : > { %p1008_p13 = pneg %p1007_p10  ;;  %p1014_p9 = por %p1013_p7, %p1012_p3 }
  0x4f   : > { %p1015_p1 = pnand %p1014_p9, %p1008_p13 }
  0x51   : > { %1018 = shalt.err (!%p1015_p1)
}
  0x52   : > { %870 = dma.hbm_to_vmem [thread:$0]  (!%p1284_p11), %s1282_s29, 256, %s1288_s8, %s178_s11, %s1126_s12, %s1126_s12, %s1127_s13  }
  0x53   : > { %s807_s14 = sshll.u32 %s1275_s26, 5  ;;  %s826_s6 = sshll.u32 %s1123_s18, 9 }
  0x54   : > { %s1327_s20 = scalar_lea.hbm %s1534_s1, %s826_s6  ;;  %s202_s5 = scalar_lea.vmem [#allocation5], %s807_s14 }
  0x55   : > { %s210_s25 = sshll.u32 %s202_s5, 4  ;;  %s1333_s0 = scalar_lea.sflag [#allocation6], %s198_s10  ;;  %s1329_s25 = int_to_ptr.vmem [resolvable:$true] %s210_s25 }
  0x56   : > { %s1019_s2 = scalar_lea.hbm %s1327_s20, 512  ;;  %s1024_s26 = scalar_lea.hbm %s1534_s1, 1024 }
  0x57   : > { %p1020_p5 = scmp.ne.s32.totalorder %s1327_s20, %s1019_s2  ;;  %p1025_p6 = scmp.lt.u32.totalorder %s1327_s20, %s1534_s1 }
  0x58   : > { %p1026_p8 = scmp.lt.u32.totalorder %s1024_s26, %s1019_s2  ;;  %p1028_p13 = scmp.lt.u32.totalorder %s1019_s2, %s1327_s20 }
  0x59   : > { %p1022_p2 = pnand %p1020_p5, %p991_p0 }
  0x5a   : > { %p1027_p10 = por %p1026_p8, %p1025_p6 }
  0x5b   : > { %p1023_p4 = pneg %p1022_p2 }
  0x5c   : > { %p1029_p3 = por %p1028_p13, %p1027_p10 }
  0x5e   : > { %p1030_p7 = pnand %p1029_p3, %p1023_p4 }
  0x60   : > { %1033 = shalt.err (!%p1030_p7)
}
  0x61   : > { %s1034_s10 = scalar_lea.vmem %s1329_s25, 512  ;;  %s1129_s11 = smov [#allocation5]  }
  0x62   : > { %p1035_p9 = scmp.ne.s32.totalorder %s1329_s25, %s1034_s10  ;;  %s1039_s14 = sshll.u32 %s1129_s11, 4  ;;  %s1040_s14 = int_to_ptr.vmem [resolvable:$false] %s1039_s14 }
  0x63   : > { %s1041_s6 = scalar_lea.vmem %s1040_s14, 1024  ;;  %p1042_p2 = scmp.lt.s32.totalorder %s1329_s25, %s1040_s14 }
  0x64   : > { %p1037_p1 = pnand %p1035_p9, %p991_p0  ;;  %p1043_p6 = scmp.lt.s32.totalorder %s1041_s6, %s1034_s10 }
  0x66   : > { %p1038_p5 = pneg %p1037_p1  ;;  %p1044_p8 = por %p1043_p6, %p1042_p2 }
  0x68   : > { %p1045_p10 = pnand %p1044_p8, %p1038_p5 }
  0x6a   : > { %1048 = shalt.err (!%p1045_p10)
}
  0x6b   : > { %s1130_s2 = smov 256   ;;  %s1131_s7 = smov 16  }
  0x6c   : > { %873 = dma.hbm_to_vmem [thread:$0]  (!%p1284_p11), %s1327_s20, 512, %s1329_s25, %s1333_s0, %s1130_s2, %s1130_s2, %s1131_s7  }
  0x6d   : > { %p1552_p0 = scmp.ne.s32.totalorder %s1545_s23, 0 }
  0x6e   : > { %s1362_s28 = sand.u32 (!%p1552_p0), 1, %s1115_s16   ;;  %p1553_p4 = scmp.ne.s32.totalorder (!%p1552_p0), %s1543_s21, 0 }
  0x6f   : > { %222 = sbr.rel (%p1552_p0) target bundleno = 1162 (0x48a), region = 36  ;;  %s812_s5 = sshll.u32 (!%p1552_p0), %s1362_s28, 4 }
  0x70   : > { %s225_s12 = scalar_lea.sflag (!%p1552_p0), [#allocation3], %s1362_s28  ;;  %s1368_s13 = scalar_lea.vmem (!%p1552_p0), [#allocation2], %s812_s5 }
  0x76   : > { %1094 = dma.done.wait (%p1553_p4), %s225_s12, 256  }
  0x77   : > { %1096 = vsyncadd (%p1553_p4), %s225_s12, 4294967040  ;;  %s233_s0 = sand.u32 1, %s1197_s19   ;;  %s813_s23 = sshll.u32 %s1362_s28, 5 }
  0x78   : > { %s234_s9 = scalar_lea.sflag [#allocation6], %s233_s0  ;;  %s1376_s20 = scalar_lea.vmem [#allocation5], %s813_s23 }
  0x79   : > { %1098 = dma.done.wait (%p1553_p4), %s234_s9, 512  }
  0x7a   : > { %1100 = vsyncadd (%p1553_p4), %s234_s9, 4294966784  ;;  %p1554_p11 = scmp.eq.s32.totalorder %s1197_s19, 0 }
  0x7c   : > { %1102 = dma.done.wait (%p1554_p11), [#allocation6], 512   ;;  %p1555_p13 = pmov %p1554_p11 }
  0x7d   : > { %vm287_vm0 = vcmask 261120   ;;  %v276_v0 = vld [vmem:[#allocation7] sm:$0xff]  ;;  %v277_v1 = vld [vmem:[#allocation7 + $0x8] sm:$0xff]  ;;  %v278_v2 = vld [vmem:[#allocation7 + $0x10] sm:$0xff]  ;;  %s1132_s21 = smov 64   ;;  %s1133_s25 = smov 96  }
  0x7e   : > { %1104 = vsyncadd (%p1555_p13), [#allocation6], 4294966784  ;;  %v845_v3 = vpack.c.bf16 %v277_v1, %v276_v0  ;;  %v279_v4 = vld [vmem:[#allocation7 + $0x18] sm:$0xff]  ;;  %v274_v5 = vld [vmem:[%s1368_s13] sm:$0xff]  ;;  %s1134_s26 = smov 32   ;;  %vm477_vm1 = vcmask 7168  }
  0x7f   : > { %v849_v6 = vpack.c.bf16 %v279_v4, %v278_v2  ;;  %842 = vmatprep.mubr.msk.f32.mxu0 %vm287_vm0, %v274_v5  ;;  %v1389_v7 = vld [vmem:[%s1376_s20] sm:$0xff]  ;;  %v370_v8 = vld [vmem:[%s1376_s20 + $0x10] sm:$0xff]  ;;  %v275_v9 = vld [vmem:[%s1368_s13 + $0x8] sm:$0xff]  ;;  %vm480_vm2 = vcmask 15360   ;;  %vm483_vm3 = vcmask 23552   ;;  %vm486_vm4 = vcmask 31744  }
  0x80   : > { %846 = vmatprep.subr.bf16.mxu0 %v845_v3  ;;  %395 = vrot.lane.b32.xlu1 %v1389_v7, %s1132_s21  ;;  %v424_v10 = vld [vmem:[%s1376_s20 + $0x18] sm:$0xff]  ;;  %v423_v11 = vld [vmem:[%s1376_s20 + $0x8] sm:$0xff]  ;;  %v816_v15 = vld [vmem:[%s1536_s3] ss:$0 sm:$0xff]  ;;  %vm492_vm5 = vcmask 48128   ;;  %vm489_vm6 = vcmask 39936  }
  0x81   : > { %848 = vmatpush3.bf16.msra.mxu0 %v845_v3  ;;  %381 = vrot.lane.b32.xlu0 %v1389_v7, %s1133_s25  ;;  %vm495_vm7 = vcmask 56320   ;;  %vm498_vm8 = vcmask 64512   ;;  %s1143_s10 = smov 104   ;;  %s1144_s11 = smov 112   ;;  %vm661_vm9 = vcmask 130048   ;;  %vm664_vm10 = vcmask 195584  }
  0x82   : > { %850 = vmatprep.subr.bf16.mxu0 %v849_v6  ;;  %s1145_s14 = smov 120   ;;  %s1146_s6 = smov 8   ;;  %vm669_vm11 = vcmask 326656   ;;  %vm675_vm12 = vcmask 457728   ;;  %vm672_vm13 = vcmask 392192   ;;  %vm678_vm14 = vcmask 523264  }
  0x83   : > { %s1147_s2 = smov 16   ;;  %s1148_s7 = smov 24  }
  0x84   : > { %397 = vrot.lane.b32.xlu1 %v370_v8, %s1132_s21  ;;  %s270_s12 = scalar_lea.vmem [#allocation8], %s812_s5  ;;  %s827_s0 = sshll.u32 %s1197_s19, 8 }
  0x85   : > { %852 = vmatpush3.bf16.msra.mxu0 %v849_v6  ;;  %383 = vrot.lane.b32.xlu0 %v370_v8, %s1133_s25  ;;  %s695_s13 = sshll.u32 %s270_s12, 4  ;;  %s1486_s9 = scalar_lea.hbm %s1537_s4, %s827_s0  ;;  %s1481_s13 = int_to_ptr.vmem [resolvable:$true] %s695_s13 }
  0x86   : > { %s682_s19 = scalar_lea.sflag [#allocation4], %s1362_s28  ;;  %s1049_s20 = scalar_lea.vmem %s1481_s13, 256 }
  0x87   : > { %p1050_p3 = scmp.ne.s32.totalorder %s1481_s13, %s1049_s20 }
  0x88   : > { %843 = vmatmul.mubr.msk.f32.vlgmr.msra.gmra.mrb[0].mxu0 %vm287_vm0, %v275_v9  ;;  %411 = vrot.lane.b32.xlu1 %v370_v8, %s1134_s26 }
  0x89   : > { %409 = vrot.lane.b32.xlu0 %v1389_v7, %s1134_s26  ;;  %p1051_p7 = pnand %p1050_p3, %p1270_p12 }
  0x8b   : > { %p1052_p9 = pneg %p1051_p7 }
  0x8c   : > { %437 = vrot.lane.b32.xlu1 %v424_v10, %s1133_s25 }
  0x8d   : > { %435 = vrot.lane.b32.xlu0 %v423_v11, %s1133_s25 }
  0x90   : > { %451 = vrot.lane.b32.xlu1 %v424_v10, %s1132_s21 }
  0x91   : > { %449 = vrot.lane.b32.xlu0 %v423_v11, %s1132_s21  ;;  %s1149_s21 = smov [#allocation8]  }
  0x94   : > { %465 = vrot.lane.b32.xlu1 %v424_v10, %s1134_s26 }
  0x95   : > { %463 = vrot.lane.b32.xlu0 %v423_v11, %s1134_s26 }
  0xf2   : > { %v396_v13 = vpop.permute.xlu1 %395 }
  0xf3   : > { %v382_v12 = vpop.permute.xlu0 %381 }
  0xf6   : > { %v398_v19 = vpop.permute.xlu1 %397 }
  0xf7   : > { %v384_v14 = vpop.permute.xlu0 %383 }
  0xfa   : > { %v412_v28 = vpop.permute.xlu1 %411 }
  0xfb   : > { %v410_v23 = vpop.permute.xlu0 %409 }
  0xfe   : > { %v438_v38 = vpop.permute.xlu1 %437 }
  0xff   : > { %v436_v33 = vpop.permute.xlu0 %435 }
 0x102   : > { %v452_v49 = vpop.permute.xlu1 %451 }
 0x103   : > { %v450_v39 = vpop.permute.xlu0 %449 }
 0x106   : > { %v466_v57 = vpop.permute.xlu1 %465 }
 0x107   : > { %v464_v48 = vpop.permute.xlu0 %463 }
 0x15b   : > { %v844_v16 = vpop.f32.mrb[0].mxu0 }
 0x15c   : > { %v1406_v17 = vadd.f32 %v844_v16, %v816_v15  ;;  %v360_v18 = vpop.f32.mrb[1].mxu0 }
 0x15d   : > { %v1408_v20 = vadd.f32 %v816_v15, %v360_v18 }
 0x15e   : > { %v388_v21 = vmul.f32 %v384_v14, %v1406_v17  ;;  %v372_v22 = vmul.f32 %v370_v8, %v1406_v17  ;;  %v402_v26 = vmul.f32 %v398_v19, %v1406_v17  ;;  %v416_v31 = vmul.f32 %v412_v28, %v1406_v17 }
 0x15f   : > { %v401_v27 = vmul.f32 %v396_v13, %v1408_v20  ;;  %v415_v32 = vmul.f32 %v410_v23, %v1408_v20  ;;  %v426_v36 = vmul.f32 %v424_v10, %v1406_v17  ;;  %v425_v37 = vmul.f32 %v423_v11, %v1408_v20 }
 0x160   : > { %v392_v24 = vsel %vm287_vm0, %v388_v21, 0.0  ;;  %v376_v25 = vsel %vm287_vm0, %v372_v22, 0.0  ;;  %v406_v29 = vsel %vm287_vm0, %v402_v26, 0.0  ;;  %v420_v34 = vsel %vm287_vm0, %v416_v31, 0.0 }
 0x161   : > { %393 = vadd.xlane.f32.xlu0 %v392_v24  ;;  %377 = vadd.xlane.f32.xlu1 %v376_v25  ;;  %v403_v30 = vsel %vm287_vm0, %v401_v27, 0.0  ;;  %v417_v35 = vsel %vm287_vm0, %v415_v32, 0.0  ;;  %v430_v40 = vsel %vm287_vm0, %v426_v36, 0.0  ;;  %v427_v41 = vsel %vm287_vm0, %v425_v37, 0.0 }
 0x162   : > { %v442_v42 = vmul.f32 %v438_v38, %v1406_v17  ;;  %v441_v43 = vmul.f32 %v436_v33, %v1408_v20  ;;  %v455_v46 = vmul.f32 %v450_v39, %v1408_v20  ;;  %v371_v47 = vmul.f32 %v1389_v7, %v1408_v20 }
 0x163   : > { %v469_v50 = vmul.f32 %v464_v48, %v1408_v20  ;;  %v387_v53 = vmul.f32 %v382_v12, %v1408_v20  ;;  %v456_v56 = vmul.f32 %v452_v49, %v1406_v17  ;;  %v470_v58 = vmul.f32 %v466_v57, %v1406_v17 }
 0x164   : > { %v446_v44 = vsel %vm287_vm0, %v442_v42, 0.0  ;;  %v443_v45 = vsel %vm287_vm0, %v441_v43, 0.0  ;;  %v457_v51 = vsel %vm287_vm0, %v455_v46, 0.0  ;;  %v373_v52 = vsel %vm287_vm0, %v371_v47, 0.0 }
 0x165   : > { %407 = vadd.xlane.f32.xlu0 %v406_v29  ;;  %404 = vadd.xlane.f32.xlu1 %v403_v30  ;;  %v471_v54 = vsel %vm287_vm0, %v469_v50, 0.0  ;;  %v389_v55 = vsel %vm287_vm0, %v387_v53, 0.0  ;;  %v460_v59 = vsel %vm287_vm0, %v456_v56, 0.0  ;;  %v474_v60 = vsel %vm287_vm0, %v470_v58, 0.0 }
 0x166   : > { %v1136_v42 = vmov 0   ;;  %v1137_v49 = vmov 2   ;;  %v1138_v50 = vmov 5   ;;  %v1141_v53 = vmov 4  }
 0x167   : > { %937 = vset.pattern.permute.xlu0 %v1136_v42 }
 0x169   : > { %421 = vadd.xlane.f32.xlu0 %v420_v34  ;;  %418 = vadd.xlane.f32.xlu1 %v417_v35 }
 0x16d   : > { %431 = vadd.xlane.f32.xlu0 %v430_v40  ;;  %428 = vadd.xlane.f32.xlu1 %v427_v41  ;;  %v1135_v41 = vmov 1  }
 0x16e   : > { %938 = vset.pattern.permute.xlu1 %v1135_v41 }
 0x171   : > { %447 = vadd.xlane.f32.xlu0 %v446_v44  ;;  %444 = vadd.xlane.f32.xlu1 %v443_v45 }
 0x175   : > { %458 = vadd.xlane.f32.xlu1 %v457_v51  ;;  %374 = vadd.xlane.f32.xlu0 %v373_v52  ;;  %v1139_v51 = vmov 3   ;;  %v1140_v52 = vmov 6  }
 0x179   : > { %472 = vadd.xlane.f32.xlu1 %v471_v54  ;;  %390 = vadd.xlane.f32.xlu0 %v389_v55  ;;  %v1142_v54 = vmov 7  }
 0x17d   : > { %461 = vadd.xlane.f32.xlu0 %v460_v59 }
 0x181   : > { %475 = vadd.xlane.f32.xlu0 %v474_v60 }
 0x1ee   : > { %v394_v61 = vpop.xlane.xlu0 %393  ;;  %v378_v62 = vpop.xlane.xlu1 %377 }
 0x1ef   : > { %v479_v12 = vsel %vm477_vm1, %v378_v62, %v394_v61 }
 0x1f2   : > { %v408_v63 = vpop.xlane.xlu0 %407  ;;  %v405_v0 = vpop.xlane.xlu1 %404 }
 0x1f3   : > { %v482_v14 = vsel %vm480_vm2, %v479_v12, %v408_v63 }
 0x1f6   : > { %v422_v1 = vpop.xlane.xlu0 %421  ;;  %v419_v2 = vpop.xlane.xlu1 %418 }
 0x1f7   : > { %v485_v18 = vsel %vm483_vm3, %v482_v14, %v422_v1 }
 0x1fa   : > { %v432_v3 = vpop.xlane.xlu0 %431  ;;  %v429_v4 = vpop.xlane.xlu1 %428 }
 0x1fb   : > { %v488_v21 = vsel %vm486_vm4, %v485_v18, %v432_v3 }
 0x1fe   : > { %v448_v5 = vpop.xlane.xlu0 %447  ;;  %v445_v6 = vpop.xlane.xlu1 %444 }
 0x1ff   : > { %v491_v24 = vsel %vm489_vm6, %v488_v21, %v448_v5 }
 0x202   : > { %v375_v7 = vpop.xlane.xlu0 %374  ;;  %v459_v8 = vpop.xlane.xlu1 %458 }
 0x206   : > { %v391_v9 = vpop.xlane.xlu0 %390  ;;  %v473_v22 = vpop.xlane.xlu1 %472 }
 0x207   : > { %v478_v10 = vsel %vm477_vm1, %v375_v7, %v391_v9 }
 0x208   : > { %v481_v11 = vsel %vm480_vm2, %v478_v10, %v405_v0 }
 0x209   : > { %v484_v13 = vsel %vm483_vm3, %v481_v11, %v419_v2 }
 0x20a   : > { %v462_v15 = vpop.xlane.xlu0 %461  ;;  %v487_v16 = vsel %vm486_vm4, %v484_v13, %v429_v4 }
 0x20b   : > { %v490_v19 = vsel %vm489_vm6, %v487_v16, %v445_v6  ;;  %v494_v26 = vsel %vm492_vm5, %v491_v24, %v462_v15 }
 0x20c   : > { %v493_v23 = vsel %vm492_vm5, %v490_v19, %v459_v8 }
 0x20d   : > { %v496_v25 = vsel %vm495_vm7, %v493_v23, %v473_v22 }
 0x20e   : > { %v476_v27 = vpop.xlane.xlu0 %475  ;;  %v499_v28 = vsel %vm498_vm8, %v496_v25, -inf }
 0x20f   : > { %500 = vmax.xlane.f32.xlu1 %v499_v28  ;;  %v497_v29 = vsel %vm495_vm7, %v494_v26, %v476_v27 }
 0x210   : > { %v502_v30 = vsel %vm498_vm8, %v497_v29, -inf }
 0x211   : > { %503 = vmax.xlane.f32.xlu0 %v502_v30 }
 0x29c   : > { %v501_v31 = vpop.xlane.xlu1 %500 }
 0x29d   : > { %v505_v32 = vsub.f32 %v496_v25, %v501_v31 }
 0x29e   : > { %v504_v33 = vpop.xlane.xlu0 %503 }
 0x29f   : > { %v507_v34 = vmul.f32 1.442695, %v505_v32  ;;  %v506_v35 = vsub.f32 %v497_v29, %v504_v33 }
 0x2a1   : > { %953 = vpow2.f32 %v507_v34  ;;  %v509_v36 = vmul.f32 1.442695, %v506_v35 }
 0x2a3   : > { %955 = vpow2.f32 %v509_v36 }
 0x2ab   : > { %v954_v37 = vpop.eup %953 }
 0x2ac   : > { %v511_v38 = vsel %vm498_vm8, %v954_v37, 0.0 }
 0x2ad   : > { %v956_v39 = vpop.eup %955  ;;  %512 = vadd.xlane.f32.xlu1 %v511_v38 }
 0x2ae   : > { %v514_v40 = vsel %vm498_vm8, %v956_v39, 0.0 }
 0x2af   : > { %515 = vadd.xlane.f32.xlu0 %v514_v40 }
 0x33a   : > { %v513_v44 = vpop.xlane.xlu1 %512 }
 0x33c   : > { %v516_v43 = vpop.xlane.xlu0 %515 }
 0x33d   : > { %957 = vrcp.f32 %v516_v43 }
 0x33e   : > { %959 = vrcp.f32 %v513_v44 }
 0x347   : > { %v958_v45 = vpop.eup %957 }
 0x348   : > { %v520_v46 = vmul.f32 %v958_v45, %v956_v39  ;;  %v960_v47 = vpop.eup %959 }
 0x349   : > { %v519_v48 = vmul.f32 %v960_v47, %v954_v37 }
 0x34a   : > { %538 = vperm.xlu1 %938, %v520_v46   ;;  %528 = vperm.xlu0 %937, %v520_v46  }
 0x34e   : > { %939 = vset.pattern.permute.xlu1 %v1137_v49  ;;  %948 = vset.pattern.permute.xlu0 %v1138_v50 }
 0x34f   : > { %548 = vperm.xlu1 %939, %v520_v46   ;;  %574 = vperm.xlu0 %948, %v519_v48  }
 0x353   : > { %940 = vset.pattern.permute.xlu1 %v1139_v51  ;;  %949 = vset.pattern.permute.xlu0 %v1140_v52 }
 0x354   : > { %558 = vperm.xlu1 %940, %v520_v46   ;;  %588 = vperm.xlu0 %949, %v520_v46  }
 0x358   : > { %941 = vset.pattern.permute.xlu1 %v1141_v53  ;;  %952 = vset.pattern.permute.xlu0 %v1142_v54 }
 0x359   : > { %568 = vperm.xlu1 %941, %v520_v46  }
 0x35d   : > { %942 = vset.pattern.permute.xlu1 %v1138_v50 }
 0x35e   : > { %578 = vperm.xlu1 %942, %v520_v46  }
 0x362   : > { %943 = vset.pattern.permute.xlu1 %v1136_v42 }
 0x363   : > { %523 = vperm.xlu1 %943, %v519_v48  }
 0x367   : > { %944 = vset.pattern.permute.xlu1 %v1135_v41 }
 0x368   : > { %534 = vperm.xlu1 %944, %v519_v48  }
 0x36c   : > { %945 = vset.pattern.permute.xlu1 %v1137_v49 }
 0x36d   : > { %544 = vperm.xlu1 %945, %v519_v48  }
 0x371   : > { %946 = vset.pattern.permute.xlu1 %v1139_v51 }
 0x372   : > { %554 = vperm.xlu1 %946, %v519_v48  }
 0x376   : > { %947 = vset.pattern.permute.xlu1 %v1141_v53 }
 0x377   : > { %564 = vperm.xlu1 %947, %v519_v48  }
 0x37b   : > { %950 = vset.pattern.permute.xlu1 %v1140_v52 }
 0x37c   : > { %584 = vperm.xlu1 %950, %v519_v48  }
 0x380   : > { %951 = vset.pattern.permute.xlu1 %v1142_v54 }
 0x381   : > { %594 = vperm.xlu1 %951, %v519_v48  }
 0x385   : > { %598 = vperm.xlu1 %951, %v520_v46  }
 0x3c9   : > { %v539_v55 = vpop.permute.xlu1 %538  ;;  %v529_v56 = vpop.permute.xlu0 %528 }
 0x3ca   : > { %v532_v57 = vmul.f32 %v529_v56, %v1406_v17  ;;  %v542_v58 = vmul.f32 %v539_v55, %v1406_v17 }
 0x3cc   : > { %607 = vrot.lane.b32.xlu1 %v532_v57, %s1133_s25 }
 0x3ce   : > { %v549_v59 = vpop.permute.xlu1 %548  ;;  %v575_v0 = vpop.permute.xlu0 %574 }
 0x3cf   : > { %v552_v60 = vmul.f32 %v549_v59, %v1406_v17  ;;  %v581_v13 = vmul.f32 %v575_v0, %v1408_v20 }
 0x3d0   : > { %615 = vrot.lane.b32.xlu1 %v542_v58, %s1143_s10 }
 0x3d3   : > { %v559_v61 = vpop.permute.xlu1 %558  ;;  %v589_v3 = vpop.permute.xlu0 %588 }
 0x3d4   : > { %623 = vrot.lane.b32.xlu1 %v552_v60, %s1144_s11  ;;  %v562_v62 = vmul.f32 %v559_v61, %v1406_v17  ;;  %v592_v4 = vmul.f32 %v589_v3, %v1406_v17 }
 0x3d8   : > { %v1452_v63 = vpop.permute.xlu1 %568  ;;  %631 = vrot.lane.b32.xlu1 %v562_v62, %s1145_s14 }
 0x3d9   : > { %v572_v43 = vmul.f32 %v1452_v63, %v1406_v17 }
 0x3dd   : > { %v579_v1 = vpop.permute.xlu1 %578 }
 0x3de   : > { %v582_v2 = vmul.f32 %v579_v1, %v1406_v17 }
 0x3e0   : > { %639 = vrot.lane.b32.xlu1 %v582_v2, %s1146_s6 }
 0x3e2   : > { %v524_v5 = vpop.permute.xlu1 %523 }
 0x3e3   : > { %v531_v6 = vmul.f32 %v524_v5, %v1408_v20 }
 0x3e4   : > { %647 = vrot.lane.b32.xlu1 %v592_v4, %s1147_s2 }
 0x3e5   : > { %605 = vrot.lane.b32.xlu0 %v531_v6, %s1133_s25  ;;  %s1053_s25 = sshll.u32 %s1149_s21, 4  ;;  %s1054_s25 = int_to_ptr.vmem [resolvable:$false] %s1053_s25 }
 0x3e6   : > { %s1055_s26 = scalar_lea.vmem %s1054_s25, 512  ;;  %p1056_p1 = scmp.lt.s32.totalorder %s1481_s13, %s1054_s25 }
 0x3e7   : > { %v535_v7 = vpop.permute.xlu1 %534  ;;  %p1057_p5 = scmp.lt.s32.totalorder %s1055_s26, %s1049_s20 }
 0x3e8   : > { %v541_v8 = vmul.f32 %v535_v7, %v1408_v20 }
 0x3e9   : > { %p1058_p2 = por %p1057_p5, %p1056_p1 }
 0x3ea   : > { %613 = vrot.lane.b32.xlu0 %v541_v8, %s1143_s10 }
 0x3eb   : > { %p1059_p6 = pnand %p1058_p2, %p1052_p9 }
 0x3ec   : > { %v545_v9 = vpop.permute.xlu1 %544 }
 0x3ed   : > { %v551_v10 = vmul.f32 %v545_v9, %v1408_v20 }
 0x3ef   : > { %621 = vrot.lane.b32.xlu0 %v551_v10, %s1144_s11 }
 0x3f1   : > { %v555_v11 = vpop.permute.xlu1 %554 }
 0x3f2   : > { %v561_v12 = vmul.f32 %v555_v11, %v1408_v20 }
 0x3f4   : > { %629 = vrot.lane.b32.xlu0 %v561_v12, %s1145_s14 }
 0x3f6   : > { %v565_v14 = vpop.permute.xlu1 %564 }
 0x3f7   : > { %v571_v37 = vmul.f32 %v565_v14, %v1408_v20 }
 0x3f8   : > { %637 = vrot.lane.b32.xlu0 %v581_v13, %s1146_s6 }
 0x3fb   : > { %v585_v15 = vpop.permute.xlu1 %584 }
 0x3fc   : > { %v591_v16 = vmul.f32 %v585_v15, %v1408_v20 }
 0x3fe   : > { %645 = vrot.lane.b32.xlu0 %v591_v16, %s1147_s2 }
 0x400   : > { %v595_v18 = vpop.permute.xlu1 %594 }
 0x401   : > { %v601_v19 = vmul.f32 %v595_v18, %v1408_v20 }
 0x403   : > { %653 = vrot.lane.b32.xlu0 %v601_v19, %s1148_s7 }
 0x404   : > { %v599_v21 = vpop.permute.xlu1 %598 }
 0x405   : > { %v602_v22 = vmul.f32 %v599_v21, %v1406_v17 }
 0x407   : > { %655 = vrot.lane.b32.xlu1 %v602_v22, %s1148_s7 }
 0x43e   : > { %v608_v24 = vpop.permute.xlu1 %607 }
 0x442   : > { %v616_v26 = vpop.permute.xlu1 %615 }
 0x443   : > { %v660_v38 = vsel %vm498_vm8, %v608_v24, %v616_v26 }
 0x446   : > { %v624_v28 = vpop.permute.xlu1 %623 }
 0x447   : > { %v663_v39 = vsel %vm661_vm9, %v660_v38, %v624_v28 }
 0x44a   : > { %v632_v30 = vpop.permute.xlu1 %631 }
 0x44b   : > { %v666_v41 = vsel %vm664_vm10, %v663_v39, %v632_v30 }
 0x44c   : > { %v668_v47 = vsel %vm287_vm0, %v666_v41, %v572_v43 }
 0x452   : > { %v640_v33 = vpop.permute.xlu1 %639 }
 0x453   : > { %v671_v48 = vsel %vm669_vm11, %v668_v47, %v640_v33 }
 0x456   : > { %v648_v44 = vpop.permute.xlu1 %647 }
 0x457   : > { %v606_v23 = vpop.permute.xlu0 %605  ;;  %v674_v17 = vsel %vm672_vm13, %v671_v48, %v648_v44 }
 0x45c   : > { %v614_v25 = vpop.permute.xlu0 %613 }
 0x45d   : > { %v659_v32 = vsel %vm498_vm8, %v606_v23, %v614_v25 }
 0x461   : > { %v622_v27 = vpop.permute.xlu0 %621 }
 0x462   : > { %v662_v34 = vsel %vm661_vm9, %v659_v32, %v622_v27 }
 0x466   : > { %v630_v29 = vpop.permute.xlu0 %629 }
 0x467   : > { %v665_v35 = vsel %vm664_vm10, %v662_v34, %v630_v29 }
 0x468   : > { %v667_v40 = vsel %vm287_vm0, %v665_v35, %v571_v37 }
 0x46a   : > { %v638_v31 = vpop.permute.xlu0 %637 }
 0x46b   : > { %v670_v42 = vsel %vm669_vm11, %v667_v40, %v638_v31 }
 0x470   : > { %v646_v36 = vpop.permute.xlu0 %645 }
 0x471   : > { %v673_v45 = vsel %vm672_vm13, %v670_v42, %v646_v36 }
 0x475   : > { %v654_v20 = vpop.permute.xlu0 %653 }
 0x476   : > { %v676_v46 = vsel %vm675_vm12, %v673_v45, %v654_v20 }
 0x477   : > { %679 = vst.msk [vmem:[%s270_s12] sm:$0xff] %vm678_vm14, %v676_v46 }
 0x479   : > { %v656_v49 = vpop.permute.xlu1 %655 }
 0x47a   : > { %v677_v50 = vsel %vm675_vm12, %v674_v17, %v656_v49 }
 0x47b   : > { %680 = vst.msk [vmem:[%s270_s12 + $0x8] sm:$0xff] %vm678_vm14, %v677_v50 }
 0x47c   : > { %1062 = shalt.err (!%p1059_p6)
}
 0x47d   : > { %s1063_s29 = scalar_lea.hbm %s1486_s9, 256  ;;  %s1067_s11 = scalar_lea.hbm %s1537_s4, 512 }
 0x47e   : > { %p1064_p8 = scmp.ne.s32.totalorder %s1486_s9, %s1063_s29  ;;  %p1068_p4 = scmp.lt.u32.totalorder %s1486_s9, %s1537_s4 }
 0x47f   : > { %p1069_p11 = scmp.lt.u32.totalorder %s1067_s11, %s1063_s29  ;;  %p1071_p3 = scmp.lt.u32.totalorder %s1063_s29, %s1486_s9 }
 0x480   : > { %p1065_p10 = pnand %p1064_p8, %p1270_p12 }
 0x481   : > { %p1070_p13 = por %p1069_p11, %p1068_p4 }
 0x482   : > { %p1066_p0 = pneg %p1065_p10 }
 0x483   : > { %p1072_p7 = por %p1071_p3, %p1070_p13 }
 0x485   : > { %p1073_p9 = pnand %p1072_p7, %p1066_p0 }
 0x487   : > { %1076 = shalt.err (!%p1073_p9)
}
 0x488   : > { %s1150_s7 = smov 128  }
 0x489   : > { %861 = dma.vmem_to_hbm [thread:$0]  (%p1270_p12), %s1481_s13, 256, %s1486_s9, %s682_s19, %s1150_s7, %s1150_s7, %s1146_s6  }
 0x48a PF: > { %s710_s12 = sand.u32 1, %s1111_s15   ;;  %p1556_p1 = scmp.ne.s32.totalorder %s1544_s22, 0 }
 0x48b   : > { %p1557_p5 = scmp.ge.s32.totalorder %s1123_s18, 2  ;;  %s711_s0 = scalar_lea.sflag [#allocation4], %s710_s12 }
 0x48d   : > { %p875_p2 = pnand %p1557_p5, %p1556_p1 }
 0x48f   : > { %1106 = dma.done.wait (!%p875_p2), %s711_s0, 256  }
 0x490   : > { %1108 = vsyncadd (!%p875_p2), %s711_s0, 4294967040  ;;  %p20_p6 = scmp.ge.s32.totalorder %s1232_s27, 4   ;;  %s1558_s15 = smov %s1115_s16 }
 0x491   : > { %s1559_s16 = smov %s1119_s17  ;;  %s1560_s17 = smov %s1266_s24 }
 0x492   : > { %s1561_s18 = smov %s1232_s27  ;;  %22 = sbr.rel (!%p20_p6) target bundleno = 10 (0xa), region = 98 }
 0x499   :  { %716 = vsyncpa [#allocation3], 1 }
 0x49a   :  { %718 = vsyncpa [#allocation3 + $0x1], 1 }
 0x49b   :  { %719 = vsyncpa [#allocation6], 1 }
 0x49c   :  { %721 = vsyncpa [#allocation6 + $0x1], 1 }
 0x49d   :  { %722 = vsyncpa [#allocation4], 1 }
 0x49e   :  { %724 = vsyncpa [#allocation4 + $0x1], 1 }

</bundles_post_ra>
